<compile_context>
chip_gen: v7x
topology: tpu7x:2x2x1
jax: 0.10.0
libtpu: 0.0.40
codegen_flags: <defaults>
</compile_context>

<pallas_src>
import itertools

import jax
import jax.numpy as jnp
import numpy as np
from jax.experimental import pallas as pl
from jax.experimental.pallas import tpu as pltpu


def _round_up(n, m):
    return ((n + m - 1) // m) * m


def _antecedent_kernel(x_ref, sel_ref, out_ref):
    """x_ref: (TB, n_in*n_mfs), sel_ref: (n_in*n_mfs, n_rules_pad), out_ref: (TB, n_rules_pad)."""
    x = x_ref[...].astype(jnp.float32)
    # Clamp away from zero: keeps log finite so the 0-entries of the one-hot
    # selector never meet -inf (0 * -inf = NaN) inside the matmul.
    logs = jnp.log(jnp.maximum(x, 1e-30))
    # Single MXU push: sum of selected logs over all variables for every rule.
    acc = jnp.dot(logs, sel_ref[...], preferred_element_type=jnp.float32)
    # exp goes to the EUP slot (free alongside MXU/VPU).
    out_ref[...] = jnp.exp(acc).astype(out_ref.dtype)


def make_mf_indices(mf_count):
    """Same as AntecedentLayer.__init__: all combinations of MF indices."""
    idx = np.array(
        list(itertools.product(*[range(n) for n in mf_count])), dtype=np.int32
    )
    return idx  # (n_rules, n_in)


def make_selector_flat(mf_indices, n_mfs, n_rules_pad):
    """Flat one-hot selector: sel[v*n_mfs + m, r] = 1 iff mf_indices[r, v] == m.

    Last dim is padded from n_rules up to n_rules_pad (multiple of 128) with
    zero columns so the kernel output is lane-dense.
    """
    n_rules, n_in = mf_indices.shape
    sel = np.zeros((n_in, n_mfs, n_rules_pad), dtype=np.float32)
    for r in range(n_rules):
        for v in range(n_in):
            sel[v, mf_indices[r, v], r] = 1.0
    return jnp.asarray(sel.reshape(n_in * n_mfs, n_rules_pad))


def antecedent_forward(x, sel_flat, n_rules, *, block_batch=512):
    """x: (batch, n_in, n_mfs); sel_flat: (n_in*n_mfs, n_rules_pad) -> (batch, n_rules)."""
    batch, n_in, n_mfs = x.shape
    k = n_in * n_mfs
    n_rules_pad = sel_flat.shape[-1]

    # Flatten the (n_in, n_mfs) trailing dims (contiguous reshape, free layout
    # plumbing) so the kernel never does sublane-strided per-variable slices.
    x_flat = x.reshape(batch, k)

    # Batch tile: multiple of 8 (f32 sublanes), capped so double-buffered tiles
    # stay well under the v7x scoped-VMEM budget even for large rule counts.
    tb = min(block_batch, _round_up(batch, 8))
    padded_batch = _round_up(batch, tb)
    if padded_batch != batch:
        x_flat = jnp.pad(
            x_flat, ((0, padded_batch - batch), (0, 0)), constant_values=1.0
        )

    grid = (padded_batch // tb,)
    out = pl.pallas_call(
        _antecedent_kernel,
        out_shape=jax.ShapeDtypeStruct((padded_batch, n_rules_pad), x.dtype),
        grid=grid,
        in_specs=[
            pl.BlockSpec((tb, k), lambda i: (i, 0)),
            # Constant index_map -> selector stays VMEM-resident across the grid.
            pl.BlockSpec((k, n_rules_pad), lambda i: (0, 0)),
        ],
        out_specs=pl.BlockSpec((tb, n_rules_pad), lambda i: (i, 0)),
        compiler_params=pltpu.CompilerParams(
            # Batch tiles are independent -> shard across TensorCores (v7x: 2 TCs).
            dimension_semantics=("parallel",),
        ),
    )(x_flat, sel_flat)

    # Drop batch padding and the zero-selector rule columns (they decode to exp(0)=1).
    return out[:batch, :n_rules]


def reference_forward(x_np, mf_indices):
    """Pure numpy reproduction of the PyTorch gather + prod."""
    batch, n_in, _ = x_np.shape
    b_idx = np.arange(batch)[:, None, None]
    v_idx = np.arange(n_in)[None, None, :]
    m_idx = mf_indices[None, :, :]  # (1, n_rules, n_in)
    ants = x_np[b_idx, v_idx, m_idx]  # (batch, n_rules, n_in)
    return np.prod(ants, axis=2)


if __name__ == "__main__":
    # Deterministic "varlist": 4 fuzzy variables, 3 membership functions each.
    mf_count = [3, 3, 3, 3]
    n_in = len(mf_count)
    n_mfs = max(mf_count)
    mf_indices = make_mf_indices(mf_count)  # (81, 4)
    n_rules = mf_indices.shape[0]
    n_rules_pad = _round_up(n_rules, 128)  # 81 -> 128 (lane-dense output)
    sel_flat = make_selector_flat(mf_indices, n_mfs, n_rules_pad)  # (12, 128)

    batch = 8
    key = jax.random.PRNGKey(0)
    # Membership values in (0, 1), as produced by a fuzzification layer.
    x = jax.random.uniform(key, (batch, n_in, n_mfs), dtype=jnp.float32)

    out = antecedent_forward(x, sel_flat, n_rules)
    out = jax.block_until_ready(out)

    ref = reference_forward(np.asarray(x), mf_indices)
    assert out.shape == (batch, n_rules)
    # Slightly looser tolerance: log/exp round-trip vs the direct product.
    np.testing.assert_allclose(np.asarray(out), ref, rtol=1e-4, atol=1e-7)
    print("KERNEL_OK")
</pallas_src>

<mosaic_0001>
module attributes {stable_mosaic.version = 11 : i64} {
  func.func @_antecedent_kernel(%arg0: i32, %arg1: memref<8x12xf32, #tpu.memory_space<vmem>>, %arg2: memref<12x128xf32, #tpu.memory_space<vmem>>, %arg3: memref<8x128xf32, #tpu.memory_space<vmem>>) attributes {dimension_semantics = [#tpu.dimension_semantics<parallel>], iteration_bounds = array<i64: 1>, scalar_prefetch = 0 : i64, scratch_operands = 0 : i64, tpu.core_type = #tpu.core_type<tc>, window_params = [{transform_indices = @transform_0, window_bounds = array<i64: 8, 12>}, {pipeline_mode = #tpu.pipeline_mode<synchronous>, transform_indices = @transform_1, window_bounds = array<i64: 12, 128>}, {transform_indices = @transform_2, window_bounds = array<i64: 8, 128>}]} {
    %c0 = arith.constant 0 : index
    %c0_0 = arith.constant 0 : index
    %0 = vector.load %arg1[%c0, %c0_0] : memref<8x12xf32, #tpu.memory_space<vmem>>, vector<8x12xf32>
    %cst = arith.constant 1.000000e-30 : f32
    %1 = vector.broadcast %cst : f32 to vector<8x12xf32>
    %2 = arith.maximumf %0, %1 : vector<8x12xf32>
    %3 = math.log %2 : vector<8x12xf32>
    %c0_1 = arith.constant 0 : index
    %c0_2 = arith.constant 0 : index
    %4 = vector.load %arg2[%c0_1, %c0_2] : memref<12x128xf32, #tpu.memory_space<vmem>>, vector<12x128xf32>
    %cst_3 = arith.constant dense<0.000000e+00> : vector<8x128xf32>
    %5 = tpu.matmul %3, %4, %cst_3 {dimension_numbers = #tpu.dot_dimension_numbers<[1], [0], [0], [1], [0, 0, 1, 1], [], []>} : vector<8x12xf32>, vector<12x128xf32>, vector<8x128xf32> -> vector<8x128xf32>
    %6 = math.exp %5 : vector<8x128xf32>
    %c0_4 = arith.constant 0 : index
    %c0_5 = arith.constant 0 : index
    %7 = vector.load %arg3[%c0_4, %c0_5] : memref<8x128xf32, #tpu.memory_space<vmem>>, vector<8x128xf32>
    tpu.vector_store %arg3[%c0_4, %c0_5], %6 {strides = array<i32>} : memref<8x128xf32, #tpu.memory_space<vmem>>, vector<8x128xf32>,
    return
  }
  func.func @transform_0(%arg0: i32) -> (i32, i32) {
    %c0_i32 = arith.constant 0 : i32
    %c0_i32_0 = arith.constant 0 : i32
    return %arg0, %c0_i32 : i32, i32
  }
  func.func @transform_1(%arg0: i32) -> (i32, i32) {
    %c0_i32 = arith.constant 0 : i32
    %c0_i32_0 = arith.constant 0 : i32
    %c0_i32_1 = arith.constant 0 : i32
    return %c0_i32, %c0_i32_0 : i32, i32
  }
  func.func @transform_2(%arg0: i32) -> (i32, i32) {
    %c0_i32 = arith.constant 0 : i32
    %c0_i32_0 = arith.constant 0 : i32
    return %arg0, %c0_i32 : i32, i32
  }
}

</mosaic_0001>

<bundles_post_ra>
// kernel: tpu_custom_call.1
= control target key start
LH: loop header
LB: loop body
LE: loop exit
PB: predicated region body
PF: predicated region fallthrough
CT: control target
= control target key end

     0   :  { %7 = vsyncpa [#allocation3], 0  ;;  %s309_s0 = inlined_call_operand.hbm [shape: f32[8,12], index: 0, kind: input, shape index: {}]   ;;  %s310_s1 = inlined_call_operand.hbm [shape: f32[12,128], index: 1, kind: input, shape index: {}]   ;;  %s311_s2 = inlined_call_operand.hbm [shape: f32[8,128], index: 2, kind: output, shape index: {}]  }
   0x1   :  { %8 = vsyncpa [#allocation6], 0 }
   0x2   :  { %9 = vsyncpa [#allocation4], 0  ;;  %s242_s9 = smov [#allocation2]   ;;  %s243_s11 = smov [#allocation5]  }
   0x3   :  { %s16_s10 = sshll.u32 %s242_s9, 4  ;;  %s25_s12 = sshll.u32 %s243_s11, 4  ;;  %s17_s10 = int_to_ptr.vmem [resolvable:$true] %s16_s10  ;;  %s266_s12 = int_to_ptr.vmem [resolvable:$true] %s25_s12 }
   0x4   :  { %s170_s15 = scalar_lea.hbm %s309_s0, 128 }
   0x5   :  { %p171_p0 = scmp.ne.s32.totalorder %s309_s0, %s170_s15  ;;  %p174_p1 = scmp.lt.u32.totalorder %s170_s15, %s309_s0 }
   0x7   :  { %p176_p2 = pnand %p174_p1, %p171_p0 }
   0x9   :  { %179 = shalt.err (!%p176_p2)
}
   0xa   :  { %s180_s20 = scalar_lea.vmem %s17_s10, 128  ;;  %p185_p4 = scmp.lt.s32.totalorder %s17_s10, %s17_s10 }
   0xb   :  { %p181_p3 = scmp.ne.s32.totalorder %s17_s10, %s180_s20  ;;  %p186_p5 = scmp.lt.s32.totalorder %s180_s20, %s180_s20 }
   0xd   :  { %p187_p6 = por %p186_p5, %p185_p4 }
   0xf   :  { %p188_p7 = pnand %p187_p6, %p181_p3 }
  0x11   :  { %191 = shalt.err (!%p188_p7)
}
  0x12   :  { %19 = dma.hbm_to_vmem [thread:$0]  %s309_s0, 128, %s17_s10, [#allocation3]  }
  0x13   :  { %s192_s25 = scalar_lea.hbm %s310_s1, 256 }
  0x14   :  { %p193_p8 = scmp.ne.s32.totalorder %s310_s1, %s192_s25  ;;  %p196_p9 = scmp.lt.u32.totalorder %s192_s25, %s310_s1 }
  0x16   :  { %p198_p10 = pnand %p196_p9, %p193_p8 }
  0x18   :  { %201 = shalt.err (!%p198_p10)
}
  0x19   :  { %s202_s30 = scalar_lea.vmem %s266_s12, 256  ;;  %p207_p12 = scmp.lt.s32.totalorder %s266_s12, %s266_s12 }
  0x1a   :  { %p203_p11 = scmp.ne.s32.totalorder %s266_s12, %s202_s30  ;;  %p208_p13 = scmp.lt.s32.totalorder %s202_s30, %s202_s30 }
  0x1c   :  { %p209_p0 = por %p208_p13, %p207_p12 }
  0x1e   :  { %p210_p1 = pnand %p209_p0, %p203_p11 }
  0x20   :  { %213 = shalt.err (!%p210_p1)
}
  0x21   :  { %s244_s0 = smov 128   ;;  %s245_s3 = smov 8  }
  0x22   :  { %31 = dma.hbm_to_vmem [thread:$0]  %s310_s1, 256, %s266_s12, [#allocation6], %s244_s0, %s244_s0, %s245_s3  }
  0x23   :  { %236 = dma.done.wait [#allocation3], 128  }
  0x24   :  { %237 = vsyncadd [#allocation3], 4294967168 }
  0x25   :  { %238 = dma.done.wait [#allocation6], 256  }
  0x26   :  { %239 = vsyncadd [#allocation6], 4294967040  ;;  %v246_v0 = vmov 0.0|0.0   ;;  %vm247_vm0 = vmmov 0   ;;  %v248_v1 = vmov 0.0   ;;  %vm48_vm1 = vcmask 1043456  }
  0x27   :  { %153 = vmatprep.subr.bf16.mxu0 %v246_v0  ;;  %150 = vmatprep.mubr.msk.f32.mxu0 %vm247_vm0, %v248_v1  ;;  %vm249_vm2 = vmmov 1   ;;  %v42_v2 = vld [vmem:[#allocation5] sm:$0xff]  ;;  %v43_v3 = vld [vmem:[#allocation5 + $0x8] sm:$0xf]  ;;  %v38_v4 = vld [vmem:[#allocation2] sm:$0xff]  ;;  %vm44_vm4 = vcmask 97280  }
  0x28   :  { %vm155_vm3 = vmpackc.low %vm48_vm1, %vm249_vm2  ;;  %v154_v5 = vpack.c.bf16 %v43_v3, %v42_v2  ;;  %v39_v6 = vmax.f32 %v38_v4, 1e-30  ;;  %s250_s1 = smov [#allocation7]  }
  0x29   :  { %s131_s6 = sshll.u32 %s250_s1, 4  ;;  %s132_s6 = int_to_ptr.vmem [resolvable:$true] %s131_s6 }
  0x2a   :  { %156 = vmatpush3.bf16.msk.msra.mxu0 %vm155_vm3, %v154_v5  ;;  %166 = vlog2.f32 %v39_v6  ;;  %s214_s7 = scalar_lea.vmem %s132_s6, 128  ;;  %p219_p3 = scmp.lt.s32.totalorder %s132_s6, %s132_s6 }
  0x2b   :  { %p215_p2 = scmp.ne.s32.totalorder %s132_s6, %s214_s7  ;;  %p220_p4 = scmp.lt.s32.totalorder %s214_s7, %s214_s7 }
  0x2d   :  { %p221_p5 = por %p220_p4, %p219_p3 }
  0x2f   :  { %p222_p6 = pnand %p221_p5, %p215_p2 }
  0x34   :  { %v167_v7 = vpop.eup %166 }
  0x35   :  { %v41_v8 = vmul.f32 0.6931472, %v167_v7 }
  0x37   :  { %151 = vmatmul.mubr.msk.f32.vlgmr.msra.gmra.mrb[0].mxu0 %vm44_vm4, %v41_v8 }
 0x10a   :  { %v118_v9 = vpop.f32.mrb[0].mxu0 }
 0x10b   :  { %v122_v10 = vmul.f32 1.442695, %v118_v9  ;;  %v152_v11 = vpop.f32.mrb[1].mxu0 }
 0x10d   :  { %168 = vpow2.f32 %v122_v10 }
 0x117   :  { %v169_v12 = vpop.eup %168 }
 0x118   :  { %124 = vst [vmem:[#allocation7] sm:$0xff] %v169_v12 }
 0x119   :  { %225 = shalt.err (!%p222_p6)
}
 0x11a   :  { %s226_s10 = scalar_lea.hbm %s311_s2, 128 }
 0x11b   :  { %p227_p7 = scmp.ne.s32.totalorder %s311_s2, %s226_s10  ;;  %p230_p8 = scmp.lt.u32.totalorder %s226_s10, %s311_s2 }
 0x11d   :  { %p232_p9 = pnand %p230_p8, %p227_p7 }
 0x11f   :  { %235 = shalt.err (!%p232_p9)
}
 0x120   :  { %134 = dma.vmem_to_hbm [thread:$0]  %s132_s6, 128, %s311_s2, [#allocation4]  }
 0x121   :  { %240 = dma.done.wait [#allocation4], 128  }
 0x122   :  { %241 = vsyncadd [#allocation4], 4294967168 }
 0x123   :  { %138 = vsyncpa [#allocation3], 1 }
 0x124   :  { %139 = vsyncpa [#allocation6], 1 }
 0x125   :  { %140 = vsyncpa [#allocation4], 1 }

</bundles_post_ra>
